<compile_context>
chip_gen: v7x
topology: tpu7x:2x2x1
jax: 0.10.0
libtpu: 0.0.40
codegen_flags: <defaults>
</compile_context>

<pallas_src>
import functools

import jax
import jax.numpy as jnp
from jax.experimental import pallas as pl
from jax.experimental.pallas import tpu as pltpu


def _round_up(v, m):
    return ((v + m - 1) // m) * m


def _bce_sdf_kernel(x_ref, t_ref, bce_ref, sdf_ref):
    """Elementwise BCE / SDF terms over a lane-dense (B, HWp) slab of gathered logits."""
    i = pl.program_id(1)  # sequential axis: ROI blocks handled by this core

    @pl.when(i == 0)
    def _():
        bce_ref[...] = jnp.zeros_like(bce_ref)
        sdf_ref[...] = jnp.zeros_like(sdf_ref)

    x = x_ref[...].astype(jnp.float32)   # logits of class label[i]
    t = t_ref[...].astype(jnp.float32)   # binary mask target

    # Numerically stable BCE-with-logits (elementwise; mean taken in the wrapper).
    bce = jnp.maximum(x, 0.0) - x * t + jnp.log1p(jnp.exp(-jnp.abs(x)))

    # Product-based SDF loss on tanh(pred) vs sign-map SDF of the target.
    p = jnp.tanh(x)                      # EUP (idle slot) instead of manual VPU tanh
    g = 1.0 - 2.0 * t
    prod = p * g
    d = p * p + g * g - prod + 1e-8      # >= ~0.75 wherever g = +/-1
    r = pl.reciprocal(d, approx=True)    # EUP approx rcp
    r = r * (2.0 - d * r)                # one Newton step -> ~fp32 accuracy
    sdf = -prod * r

    # Pure-VPU accumulation into the VMEM-resident per-core output blocks.
    bce_ref[...] += bce
    sdf_ref[...] += sdf


@functools.partial(jax.jit, static_argnames=("block_rois",))
def _bce_sdf_sums(pred, target, label, *, block_rois=512):
    """Returns (bce_sum, sdf_sum) over the N*H*W elements of pred[i, label[i]]."""
    N, C, H, W = pred.shape
    HW = H * W
    HWp = _round_up(HW, 128)                      # lane-dense last dim

    # Class-channel gather in the wrapper (labels clamped so bad labels can't OOB).
    lab = jnp.clip(label.astype(jnp.int32), 0, C - 1)
    x = jnp.take_along_axis(pred.reshape(N, C, HW), lab[:, None, None], axis=1)[:, 0, :]
    t = target.reshape(N, HW)                     # keep original dtype; cast in-kernel

    # ROIs per grid step: multiple of 8, capped by block_rois, N, and a VMEM budget
    # (2 double-buffered inputs + 2 (<=double-buffered) f32 accumulators per row).
    in_bytes = x.dtype.itemsize + t.dtype.itemsize
    per_row = HWp * (2 * in_bytes + 16)
    budget = 24 * 1024 * 1024
    b_cap = max(8, (budget // per_row) // 8 * 8)
    B = int(min(block_rois, b_cap, _round_up(N, 8)))

    num_blocks = pl.cdiv(N, B)
    num_par = 2 if num_blocks >= 2 else 1         # adaptive megacore split
    steps_per_core = pl.cdiv(num_blocks, num_par)
    n_pad = num_par * steps_per_core * B

    x = jnp.pad(x, ((0, n_pad - N), (0, HWp - HW)))
    t = jnp.pad(t, ((0, n_pad - N), (0, HWp - HW)))

    bce_acc, sdf_acc = pl.pallas_call(
        _bce_sdf_kernel,
        out_shape=(jax.ShapeDtypeStruct((num_par * B, HWp), jnp.float32),
                   jax.ShapeDtypeStruct((num_par * B, HWp), jnp.float32)),
        grid=(num_par, steps_per_core),
        in_specs=[
            pl.BlockSpec((B, HWp), lambda c, i: (c * steps_per_core + i, 0)),
            pl.BlockSpec((B, HWp), lambda c, i: (c * steps_per_core + i, 0)),
        ],
        out_specs=(
            pl.BlockSpec((B, HWp), lambda c, i: (c, 0)),   # resident across i
            pl.BlockSpec((B, HWp), lambda c, i: (c, 0)),
        ),
        compiler_params=pltpu.CompilerParams(
            dimension_semantics=("parallel", "arbitrary"),
            vmem_limit_bytes=32 * 1024 * 1024),
    )(x, t)

    # Padded (x=0, t=0) elements contribute exactly log(2) to BCE and exactly 0 to
    # SDF -> subtract the analytic padding contribution instead of masking in-kernel.
    pad_count = n_pad * HWp - N * HW
    bce_sum = jnp.sum(bce_acc) - jnp.float32(pad_count) * jnp.log(jnp.float32(2.0))
    sdf_sum = jnp.sum(sdf_acc)
    return bce_sum, sdf_sum


class BCESDFLoss:
    """Pallas port of mmdet BCE_SDF_Loss (forward pass only)."""

    def __init__(self, start_alpha, step_alpha, max_alpha, alpha_strategy):
        self.start_alpha = start_alpha
        self.step_alpha = step_alpha
        self.max_alpha = max_alpha
        self.alpha_strategy = alpha_strategy
        self.count_iter = 0

    def __call__(self, pred, target, label):
        N, C, H, W = pred.shape
        n_elem = float(N * H * W)

        bce_sum, sdf_sum = _bce_sdf_sums(pred, target, label)
        bce_loss = (bce_sum / n_elem)[None]   # shape (1,), matches mask_cross_entropy[None]
        sdf_loss = sdf_sum / n_elem

        cur_alpha = self.start_alpha + int(self.count_iter / 1120) * self.step_alpha
        if cur_alpha > self.max_alpha:
            cur_alpha = self.max_alpha

        if self.alpha_strategy in ("constant", "increase"):
            combine_loss = bce_loss + cur_alpha * sdf_loss
        elif self.alpha_strategy == "rebalance":
            combine_loss = (1.0 - cur_alpha) * bce_loss + cur_alpha * sdf_loss
        else:
            raise ValueError(f"unknown alpha_strategy: {self.alpha_strategy}")

        self.count_iter += 1
        return combine_loss


if __name__ == "__main__":
    key = jax.random.PRNGKey(0)
    k1, k2, k3 = jax.random.split(key, 3)

    N, C, H, W = 2, 4, 16, 16
    pred = jax.random.normal(k1, (N, C, H, W), dtype=jnp.float32)
    target = (jax.random.uniform(k2, (N, H, W)) > 0.5).astype(jnp.float32)
    label = jax.random.randint(k3, (N,), 0, C, dtype=jnp.int32)

    loss_mod = BCESDFLoss(start_alpha=0.1, step_alpha=0.1, max_alpha=0.5,
                          alpha_strategy="rebalance")

    out = loss_mod(pred, target, label)
    jax.block_until_ready(out)

    # Pure-JAX reference check (silent on success).
    idx = jnp.arange(N)
    x = pred[idx, label].reshape(N, H, W)
    bce_ref = jnp.mean(jnp.maximum(x, 0.0) - x * target +
                       jnp.log1p(jnp.exp(-jnp.abs(x))))[None]
    p = jnp.tanh(x)
    g = 1.0 - 2.0 * target
    sdf_ref = jnp.mean(-(p * g) / (p * p + g * g - p * g + 1e-8))
    ref = (1.0 - 0.1) * bce_ref + 0.1 * sdf_ref
    assert out.shape == (1,)
    assert jnp.allclose(out, ref, atol=1e-4, rtol=1e-4), (out, ref)

    print("KERNEL_OK")
</pallas_src>

<mosaic_0001>
module attributes {stable_mosaic.version = 11 : i64} {
  func.func @_bce_sdf_kernel(%arg0: i32, %arg1: i32, %arg2: memref<8x256xf32, #tpu.memory_space<vmem>>, %arg3: memref<8x256xf32, #tpu.memory_space<vmem>>, %arg4: memref<8x256xf32, #tpu.memory_space<vmem>>, %arg5: memref<8x256xf32, #tpu.memory_space<vmem>>) attributes {dimension_semantics = [#tpu.dimension_semantics<parallel>, #tpu.dimension_semantics<arbitrary>], iteration_bounds = array<i64: 1, 1>, scalar_prefetch = 0 : i64, scratch_operands = 0 : i64, tpu.core_type = #tpu.core_type<tc>, window_params = [{transform_indices = @transform_0, window_bounds = array<i64: 8, 256>}, {transform_indices = @transform_1, window_bounds = array<i64: 8, 256>}, {transform_indices = @transform_2, window_bounds = array<i64: 8, 256>}, {transform_indices = @transform_3, window_bounds = array<i64: 8, 256>}]} {
    %c0_i32 = arith.constant 0 : i32
    %0 = arith.cmpi eq, %arg1, %c0_i32 : i32
    %1 = arith.extui %0 : i1 to i32
    %c0_i32_0 = arith.constant 0 : i32
    %2 = arith.cmpi ne, %1, %c0_i32_0 : i32
    scf.if %2 {
      %cst_18 = arith.constant 0.000000e+00 : f32
      %41 = vector.broadcast %cst_18 : f32 to vector<8x256xf32>
      %c0_19 = arith.constant 0 : index
      %c0_20 = arith.constant 0 : index
      %42 = vector.load %arg4[%c0_19, %c0_20] : memref<8x256xf32, #tpu.memory_space<vmem>>, vector<8x256xf32>
      tpu.vector_store %arg4[%c0_19, %c0_20], %41 {strides = array<i32>} : memref<8x256xf32, #tpu.memory_space<vmem>>, vector<8x256xf32>,
      %cst_21 = arith.constant 0.000000e+00 : f32
      %43 = vector.broadcast %cst_21 : f32 to vector<8x256xf32>
      %c0_22 = arith.constant 0 : index
      %c0_23 = arith.constant 0 : index
      %44 = vector.load %arg5[%c0_22, %c0_23] : memref<8x256xf32, #tpu.memory_space<vmem>>, vector<8x256xf32>
      tpu.vector_store %arg5[%c0_22, %c0_23], %43 {strides = array<i32>} : memref<8x256xf32, #tpu.memory_space<vmem>>, vector<8x256xf32>,
    } else {
    }
    %c0 = arith.constant 0 : index
    %c0_1 = arith.constant 0 : index
    %3 = vector.load %arg2[%c0, %c0_1] : memref<8x256xf32, #tpu.memory_space<vmem>>, vector<8x256xf32>
    %c0_2 = arith.constant 0 : index
    %c0_3 = arith.constant 0 : index
    %4 = vector.load %arg3[%c0_2, %c0_3] : memref<8x256xf32, #tpu.memory_space<vmem>>, vector<8x256xf32>
    %cst = arith.constant 0.000000e+00 : f32
    %5 = vector.broadcast %cst : f32 to vector<8x256xf32>
    %6 = arith.maximumf %3, %5 : vector<8x256xf32>
    %7 = arith.mulf %3, %4 : vector<8x256xf32>
    %8 = arith.subf %6, %7 : vector<8x256xf32>
    %9 = math.absf %3 : vector<8x256xf32>
    %cst_4 = arith.constant 0.000000e+00 : f32
    %10 = vector.broadcast %cst_4 : f32 to vector<8x256xf32>
    %11 = arith.subf %10, %9 : vector<8x256xf32>
    %12 = math.exp %11 : vector<8x256xf32>
    %13 = math.log1p %12 : vector<8x256xf32>
    %14 = arith.addf %8, %13 : vector<8x256xf32>
    %15 = math.tanh %3 : vector<8x256xf32>
    %cst_5 = arith.constant 2.000000e+00 : f32
    %16 = vector.broadcast %cst_5 : f32 to vector<8x256xf32>
    %17 = arith.mulf %16, %4 : vector<8x256xf32>
    %cst_6 = arith.constant 1.000000e+00 : f32
    %18 = vector.broadcast %cst_6 : f32 to vector<8x256xf32>
    %19 = arith.subf %18, %17 : vector<8x256xf32>
    %20 = arith.mulf %15, %19 : vector<8x256xf32>
    %21 = arith.mulf %15, %15 : vector<8x256xf32>
    %22 = arith.mulf %19, %19 : vector<8x256xf32>
    %23 = arith.addf %21, %22 : vector<8x256xf32>
    %24 = arith.subf %23, %20 : vector<8x256xf32>
    %cst_7 = arith.constant 9.99999993E-9 : f32
    %25 = vector.broadcast %cst_7 : f32 to vector<8x256xf32>
    %26 = arith.addf %24, %25 : vector<8x256xf32>
    %27 = tpu.reciprocal %26 {approx = true} : vector<8x256xf32> -> vector<8x256xf32>
    %28 = arith.mulf %26, %27 : vector<8x256xf32>
    %cst_8 = arith.constant 2.000000e+00 : f32
    %29 = vector.broadcast %cst_8 : f32 to vector<8x256xf32>
    %30 = arith.subf %29, %28 : vector<8x256xf32>
    %31 = arith.mulf %27, %30 : vector<8x256xf32>
    %cst_9 = arith.constant 0.000000e+00 : f32
    %32 = vector.broadcast %cst_9 : f32 to vector<8x256xf32>
    %33 = arith.subf %32, %20 : vector<8x256xf32>
    %34 = arith.mulf %33, %31 : vector<8x256xf32>
    %c0_10 = arith.constant 0 : index
    %c0_11 = arith.constant 0 : index
    %35 = vector.load %arg4[%c0_10, %c0_11] : memref<8x256xf32, #tpu.memory_space<vmem>>, vector<8x256xf32>
    %36 = arith.addf %35, %14 : vector<8x256xf32>
    %c0_12 = arith.constant 0 : index
    %c0_13 = arith.constant 0 : index
    %37 = vector.load %arg4[%c0_12, %c0_13] : memref<8x256xf32, #tpu.memory_space<vmem>>, vector<8x256xf32>
    tpu.vector_store %arg4[%c0_12, %c0_13], %36 {strides = array<i32>} : memref<8x256xf32, #tpu.memory_space<vmem>>, vector<8x256xf32>,
    %c0_14 = arith.constant 0 : index
    %c0_15 = arith.constant 0 : index
    %38 = vector.load %arg5[%c0_14, %c0_15] : memref<8x256xf32, #tpu.memory_space<vmem>>, vector<8x256xf32>
    %39 = arith.addf %38, %34 : vector<8x256xf32>
    %c0_16 = arith.constant 0 : index
    %c0_17 = arith.constant 0 : index
    %40 = vector.load %arg5[%c0_16, %c0_17] : memref<8x256xf32, #tpu.memory_space<vmem>>, vector<8x256xf32>
    tpu.vector_store %arg5[%c0_16, %c0_17], %39 {strides = array<i32>} : memref<8x256xf32, #tpu.memory_space<vmem>>, vector<8x256xf32>,
    return
  }
  func.func @transform_0(%arg0: i32, %arg1: i32) -> (i32, i32) {
    %c1_i32 = arith.constant 1 : i32
    %0 = arith.muli %arg0, %c1_i32 : i32
    %1 = arith.addi %0, %arg1 : i32
    %c0_i32 = arith.constant 0 : i32
    %c0_i32_0 = arith.constant 0 : i32
    return %1, %c0_i32 : i32, i32
  }
  func.func @transform_1(%arg0: i32, %arg1: i32) -> (i32, i32) {
    %c1_i32 = arith.constant 1 : i32
    %0 = arith.muli %arg0, %c1_i32 : i32
    %1 = arith.addi %0, %arg1 : i32
    %c0_i32 = arith.constant 0 : i32
    %c0_i32_0 = arith.constant 0 : i32
    return %1, %c0_i32 : i32, i32
  }
  func.func @transform_2(%arg0: i32, %arg1: i32) -> (i32, i32) {
    %c0_i32 = arith.constant 0 : i32
    %c0_i32_0 = arith.constant 0 : i32
    return %arg0, %c0_i32 : i32, i32
  }
  func.func @transform_3(%arg0: i32, %arg1: i32) -> (i32, i32) {
    %c0_i32 = arith.constant 0 : i32
    %c0_i32_0 = arith.constant 0 : i32
    return %arg0, %c0_i32 : i32, i32
  }
}

</mosaic_0001>

<bundles_post_ra>
// kernel: _bce_sdf_sums.1
= control target key start
LH: loop header
LB: loop body
LE: loop exit
PB: predicated region body
PF: predicated region fallthrough
CT: control target
= control target key end

     0   :  { %s222_s0 = inlined_call_operand.vmem [shape: f32[8,256], index: 0, kind: input, shape index: {}]   ;;  %s223_s1 = inlined_call_operand.vmem [shape: f32[8,256], index: 1, kind: input, shape index: {}]   ;;  %s224_s2 = inlined_call_operand.vmem [shape: f32[8,256], index: 2, kind: output, shape index: {0}]   ;;  %s225_s3 = inlined_call_operand.vmem [shape: f32[8,256], index: 3, kind: output, shape index: {1}]  }
   0x1   :  { %v61_v0 = vld [vmem:[%s222_s0] sm:$0xff]  ;;  %v62_v2 = vld [vmem:[%s222_s0 + $0x8] sm:$0xff] }
   0x2   :  { %v63_v1 = vld [vmem:[%s223_s1] sm:$0xff]  ;;  %v71_v3 = vand.u32 2147483647, %v61_v0  ;;  %162 = vtanh.f32 %v61_v0  ;;  %v64_v4 = vld [vmem:[%s223_s1 + $0x8] sm:$0xff]  ;;  %v72_v6 = vand.u32 2147483647, %v62_v2 }
   0x3   :  { %v101_v5 = vmul.f32 2.0, %v63_v1  ;;  %164 = vtanh.f32 %v62_v2  ;;  %v102_v9 = vmul.f32 2.0, %v64_v4  ;;  %v65_v35 = vmax.f32 %v61_v0, 0.0 }
   0x4   :  { %v73_v7 = vsub.f32 0.0, %v71_v3  ;;  %v74_v8 = vsub.f32 0.0, %v72_v6  ;;  %v67_v36 = vmul.f32 %v63_v1, %v61_v0  ;;  %v66_v39 = vmax.f32 %v62_v2, 0.0 }
   0x5   :  { %v103_v12 = vsub.f32 1.0, %v101_v5  ;;  %v104_v13 = vsub.f32 1.0, %v102_v9  ;;  %v68_v40 = vmul.f32 %v64_v4, %v62_v2 }
   0x6   :  { %v75_v10 = vmul.f32 1.442695, %v73_v7  ;;  %v77_v11 = vmul.f32 1.442695, %v74_v8  ;;  %v69_v44 = vsub.f32 %v65_v35, %v67_v36 }
   0x7   :  { %v109_v14 = vmul.f32 %v103_v12, %v103_v12  ;;  %v110_v18 = vmul.f32 %v104_v13, %v104_v13  ;;  %v70_v48 = vsub.f32 %v66_v39, %v68_v40 }
   0x8   :  { %166 = vpow2.f32 %v75_v10 }
   0x9   :  { %168 = vpow2.f32 %v77_v11 }
   0xc   :  { %v163_v15 = vpop.eup %162 }
   0xd   :  { %v105_v16 = vmul.f32 %v163_v15, %v103_v12  ;;  %v107_v17 = vmul.f32 %v163_v15, %v163_v15  ;;  %v165_v19 = vpop.eup %164 }
   0xe   :  { %v108_v21 = vmul.f32 %v165_v19, %v165_v19  ;;  %v106_v22 = vmul.f32 %v165_v19, %v104_v13 }
   0xf   :  { %v111_v20 = vadd.f32 %v109_v14, %v107_v17  ;;  %v125_v59 = vsub.f32 0.0, %v105_v16 }
  0x10   :  { %v112_v24 = vadd.f32 %v110_v18, %v108_v21  ;;  %v126_v61 = vsub.f32 0.0, %v106_v22 }
  0x11   :  { %v113_v23 = vsub.f32 %v111_v20, %v105_v16 }
  0x12   :  { %v167_v25 = vpop.eup %166  ;;  %v114_v30 = vsub.f32 %v112_v24, %v106_v22 }
  0x13   :  { %v169_v26 = vpop.eup %168  ;;  %v79_v27 = vadd.f32 1.0, %v167_v25  ;;  %v115_v28 = vadd.f32 1e-08, %v113_v23  ;;  %v82_v31 = vmul.f32 -0.5, %v167_v25  ;;  %v85_v37 = vand.u32 2147483647, %v167_v25 }
  0x14   :  { %v88_v29 = vadd.f32 1.0, %v169_v26  ;;  %v116_v32 = vadd.f32 1e-08, %v114_v30  ;;  %v91_v33 = vmul.f32 -0.5, %v169_v26  ;;  %v94_v41 = vand.u32 2147483647, %v169_v26 }
  0x15   :  { %170 = vlog2.f32 %v79_v27  ;;  %v83_v34 = vadd.f32 1.0, %v82_v31  ;;  %vm86_vm0 = vcmp.lt.f32.partialorder %v85_v37, 0.0004427343 }
  0x16   :  { %172 = vlog2.f32 %v88_v29  ;;  %v92_v38 = vadd.f32 1.0, %v91_v33  ;;  %vm95_vm1 = vcmp.lt.f32.partialorder %v94_v41, 0.0004427343 }
  0x17   :  { %174 = vrcp.f32 %v115_v28  ;;  %v84_v42 = vmul.f32 %v167_v25, %v83_v34 }
  0x18   :  { %176 = vrcp.f32 %v116_v32  ;;  %v93_v45 = vmul.f32 %v169_v26, %v92_v38 }
  0x1f   :  { %v171_v43 = vpop.eup %170 }
  0x20   :  { %v173_v46 = vpop.eup %172  ;;  %v81_v47 = vmul.f32 0.6931472, %v171_v43 }
  0x21   :  { %v175_v49 = vpop.eup %174  ;;  %v90_v50 = vmul.f32 0.6931472, %v173_v46 }
  0x22   :  { %v177_v51 = vpop.eup %176  ;;  %v87_v52 = vsel %vm86_vm0, %v84_v42, %v81_v47  ;;  %v119_v53 = vmul.f32 %v175_v49, %v115_v28 }
  0x23   :  { %v97_v54 = vadd.f32 %v87_v52, %v69_v44  ;;  %v96_v55 = vsel %vm95_vm1, %v93_v45, %v90_v50  ;;  %v120_v56 = vmul.f32 %v177_v51, %v116_v32 }
  0x24   :  { %v98_v57 = vadd.f32 %v96_v55, %v70_v48  ;;  %v121_v58 = vsub.f32 2.0, %v119_v53 }
  0x25   :  { %v122_v60 = vsub.f32 2.0, %v120_v56  ;;  %133 = vst [vmem:[%s224_s2] sm:$0xff] %v97_v54 }
  0x26   :  { %v123_v62 = vmul.f32 %v175_v49, %v121_v58  ;;  %134 = vst [vmem:[%s224_s2 + $0x8] sm:$0xff] %v98_v57 }
  0x27   :  { %v124_v63 = vmul.f32 %v177_v51, %v122_v60 }
  0x28   :  { %v127_v0 = vmul.f32 %v125_v59, %v123_v62 }
  0x29   :  { %v128_v1 = vmul.f32 %v126_v61, %v124_v63 }
  0x2a   :  { %139 = vst [vmem:[%s225_s3] sm:$0xff] %v127_v0 }
  0x2b   :  { %140 = vst [vmem:[%s225_s3 + $0x8] sm:$0xff] %v128_v1 }

</bundles_post_ra>
